<compile_context>
chip_gen: v7x
topology: tpu7x:2x2x1
jax: 0.10.0
libtpu: 0.0.40
codegen_flags: <defaults>
</compile_context>

<pallas_src>
import functools

import jax
import jax.numpy as jnp
from jax.experimental import pallas as pl
from jax.experimental.pallas import tpu as pltpu


def _round_down8(v):
    return (v // 8) * 8


def _default_vmem_limit_bytes():
    """Per-generation VMEM limit: ~3/4 of physical capacity, capped at 96 MiB."""
    cap = 128 * 1024 * 1024
    try:
        info = pltpu.get_tpu_info()
        cap = int(getattr(info, "vmem_capacity_bytes", cap) or cap)
    except Exception:
        pass
    return max(min(cap * 3 // 4, 96 * 1024 * 1024), 16 * 1024 * 1024)


def prepare_patch_merging_params(gamma, beta, w_red, *, compute_dtype):
    """One-time folding of LayerNorm affine + torch concat order into the weight.

    Args:
      gamma, beta: (4C,) LayerNorm affine params.
      w_red:       (2C_out, 4C) nn.Linear weight (PyTorch out_features x in_features).
    Returns:
      w0:     (2C, co) rows of diag(gamma) @ W^T for the h-even half of the window
              (kernel channel order within a half = (w2, c)),
      w1:     (2C, co) rows for the h-odd half,
      colsum: (1, co) f32 column sums of the gamma-folded W^T (mean correction),
      brow:   (1, co) f32 bias row = beta @ W^T.
    Do this once per layer in production (not per forward call).
    """
    c4 = gamma.shape[0]
    c = c4 // 4
    co = w_red.shape[0]

    wt = jnp.transpose(w_red).astype(jnp.float32)          # (4C, co)
    wg = gamma.astype(jnp.float32)[:, None] * wt            # fold LN scale
    # torch concat order over the 2x2 window: [(h0,w0), (h1,w0), (h0,w1), (h1,w1)]
    # kernel (memory) order:                  [(h0,w0), (h0,w1), (h1,w0), (h1,w1)]
    perm = jnp.asarray([0, 2, 1, 3])
    wg = wg.reshape(4, c, co)[perm].reshape(c4, co)

    brow = (beta.astype(jnp.float32) @ wt).reshape(1, co)
    colsum = jnp.sum(wg, axis=0).reshape(1, co)              # permutation-invariant

    w0 = wg[: 2 * c].astype(compute_dtype)
    w1 = wg[2 * c:].astype(compute_dtype)
    return w0, w1, colsum, brow


def _patch_merging_kernel(x_ref, w0_ref, w1_ref, colsum_ref, brow_ref, o_ref, *,
                          c2, wo_count, co, eps):
    # x_ref  : (tm, 2*Wp*C)  one row = (h2, wo, w2, c) for one (b, d, ho) slab
    # w0_ref : (2C, co)      gamma-folded weight rows, h-even half (resident in VMEM)
    # w1_ref : (2C, co)      h-odd half
    # colsum : (1, co) f32   column sums of the gamma-folded W^T
    # brow   : (1, co) f32   beta @ W^T
    # o_ref  : (tm, Wo*co)
    half = wo_count * c2
    inv_c4 = 1.0 / (2.0 * c2)

    # Grid-invariant operands: single resident VMEM copy, loaded once per grid step.
    w0 = w0_ref[...]
    w1 = w1_ref[...]
    colsum = colsum_ref[...]
    brow = brow_ref[...]

    # Static loop over the Wo merged output columns of this slab block (static lane
    # offsets -> plain vector loads/stores; all iterations share the resident RHS).
    for wo in range(wo_count):
        a = x_ref[:, wo * c2:(wo + 1) * c2]                        # h-even (tm, 2C)
        b = x_ref[:, half + wo * c2: half + (wo + 1) * c2]         # h-odd  (tm, 2C)

        # LayerNorm statistics over the 4C window, accumulated in f32.
        af = a.astype(jnp.float32)
        bf = b.astype(jnp.float32)
        s = jnp.sum(af, axis=-1, keepdims=True) + jnp.sum(bf, axis=-1, keepdims=True)
        ss = (jnp.sum(af * af, axis=-1, keepdims=True)
              + jnp.sum(bf * bf, axis=-1, keepdims=True))
        mean = s * inv_c4
        var = jnp.maximum(ss * inv_c4 - mean * mean, 0.0)   # single-pass, f32
        rstd = jax.lax.rsqrt(var + eps)

        # Uncentered matmul: mean correction applied on the narrow (tm, co) output.
        a_m = a if a.dtype == w0.dtype else a.astype(w0.dtype)
        b_m = b if b.dtype == w1.dtype else b.astype(w1.dtype)
        acc = jnp.dot(a_m, w0, preferred_element_type=jnp.float32)
        acc = acc + jnp.dot(b_m, w1, preferred_element_type=jnp.float32)
        out = rstd * (acc - mean * colsum) + brow

        o_ref[:, wo * co:(wo + 1) * co] = out.astype(o_ref.dtype)


def _choose_row_tile(m, in_row_bytes, out_row_bytes, temp_row_bytes, const_bytes,
                     vmem_limit, max_rows=256):
    """Pick the row tile of the (M, 2*Wp*C) view from the VMEM budget."""
    if m <= 8:
        return m
    # Double-buffered input + output blocks, plus in-kernel f32 temporaries, plus the
    # single-buffered resident weights must sit comfortably under the VMEM limit.
    budget = max(vmem_limit // 2 - const_bytes, 1 << 20)
    per_row = 2 * (in_row_bytes + out_row_bytes) + temp_row_bytes
    tm = int(budget // max(per_row, 1))
    tm = min(tm, max_rows)           # bound vreg pressure of the unrolled wo-loop
    if m >= 16:
        tm = min(tm, -(-m // 2))     # grid >= 2: feed both v7x cores, overlap DMA
    tm = max(8, min(tm, m))
    if tm >= m:
        return m
    return max(8, _round_down8(tm))


def patch_merging_forward(x, gamma, beta, w_red, *, eps=1e-5, compute_dtype=None,
                          vmem_limit_bytes=None, max_block_rows=256):
    """PatchMerging forward (fused 2x2 gather + LayerNorm + bias-free Linear).

    Args:
      x:      (B, D, H, W, C) features (channels-last, as the torch forward expects).
      gamma:  (4C,) LayerNorm weight.
      beta:   (4C,) LayerNorm bias.
      w_red:  (2C, 4C) Linear weight (PyTorch layout, bias-free).
    Returns:
      (B, D, ceil(H/2), ceil(W/2), 2C), same dtype as x.
    """
    B, D, H, W, C = x.shape
    c4 = 4 * C
    assert gamma.shape == (c4,) and beta.shape == (c4,)
    co = w_red.shape[0]
    assert w_red.shape == (co, c4)

    if compute_dtype is None:
        # Feed the MXU in the activation dtype: bf16 in -> bf16 operands, f32 in -> f32.
        compute_dtype = jnp.bfloat16 if x.dtype == jnp.bfloat16 else jnp.float32

    # Matches F.pad(x, (0, 0, 0, W % 2, 0, H % 2)).
    if H % 2 or W % 2:
        x = jnp.pad(x, ((0, 0), (0, 0), (0, H % 2), (0, W % 2), (0, 0)))
    Hp, Wp = x.shape[2], x.shape[3]
    Ho, Wo = Hp // 2, Wp // 2
    M = B * D * Ho
    c2 = 2 * C
    out_dtype = x.dtype

    # One-time parameter folding (hoist out of the step function in production).
    w0, w1, colsum, brow = prepare_patch_merging_params(
        gamma, beta, w_red, compute_dtype=compute_dtype)

    # Free row-major view: each row = one (b, d, ho) slab = two full input image rows.
    x2d = x.reshape(M, 2 * Wp * C)

    if vmem_limit_bytes is None:
        vmem_limit_bytes = _default_vmem_limit_bytes()

    in_row_bytes = 2 * Wp * C * x.dtype.itemsize
    out_row_bytes = Wo * co * jnp.dtype(out_dtype).itemsize
    temp_row_bytes = 4 * (2 * c2 + 2 * co)                     # in-kernel f32 temps
    const_bytes = 2 * c2 * co * jnp.dtype(compute_dtype).itemsize + 2 * co * 4

    tm = _choose_row_tile(M, in_row_bytes, out_row_bytes, temp_row_bytes, const_bytes,
                          vmem_limit_bytes, max_rows=max_block_rows)
    grid = (pl.cdiv(M, tm),)

    kernel = functools.partial(_patch_merging_kernel, c2=c2, wo_count=Wo, co=co,
                               eps=float(eps))

    # Grid-invariant operands: whole-array VMEM residents (single buffer, no per-step
    # DMA, no runtime capability probe).
    vmem_spec = pl.BlockSpec(memory_space=pltpu.MemorySpace.VMEM)

    out2d = pl.pallas_call(
        kernel,
        out_shape=jax.ShapeDtypeStruct((M, Wo * co), out_dtype),
        grid_spec=pltpu.PrefetchScalarGridSpec(
            num_scalar_prefetch=0,
            grid=grid,
            in_specs=[
                pl.BlockSpec((tm, 2 * Wp * C), lambda i: (i, 0)),
                vmem_spec,   # w0
                vmem_spec,   # w1
                vmem_spec,   # colsum
                vmem_spec,   # brow
            ],
            # Block last dim equals the full array dim -> no 128-padding, no wrapper
            # de-pad slice pass, stores stay within the kernel's own output window.
            out_specs=pl.BlockSpec((tm, Wo * co), lambda i: (i, 0)),
        ),
        compiler_params=pltpu.CompilerParams(
            dimension_semantics=("parallel",),
            vmem_limit_bytes=int(vmem_limit_bytes),
        ),
    )(x2d, w0, w1, colsum, brow)

    # Free reshapes back to (B, D, Ho, Wo, 2C).
    return out2d.reshape(B, D, Ho, Wo, co)


def _reference(x, gamma, beta, w_red, eps=1e-5):
    """Pure-JAX reference mirroring the PyTorch forward (f32)."""
    B, D, H, W, C = x.shape
    if H % 2 or W % 2:
        x = jnp.pad(x, ((0, 0), (0, 0), (0, H % 2), (0, W % 2), (0, 0)))
    x0 = x[:, :, 0::2, 0::2, :]
    x1 = x[:, :, 1::2, 0::2, :]
    x2 = x[:, :, 0::2, 1::2, :]
    x3 = x[:, :, 1::2, 1::2, :]
    xc = jnp.concatenate([x0, x1, x2, x3], axis=-1).astype(jnp.float32)
    mean = jnp.mean(xc, axis=-1, keepdims=True)
    var = jnp.mean((xc - mean) ** 2, axis=-1, keepdims=True)
    y = (xc - mean) * jax.lax.rsqrt(var + eps) * gamma + beta
    return jnp.einsum("...i,oi->...o", y, w_red).astype(x.dtype)


if __name__ == "__main__":
    key = jax.random.PRNGKey(0)
    configs = [
        # (B, D, H, W, C)
        (2, 2, 8, 8, 64),     # even spatial dims; 2C = 128 (lane-aligned), 2-step grid
        (1, 2, 7, 9, 48),     # odd H/W -> pad path; 2C = 96 (misaligned lane slices)
        (1, 3, 10, 12, 64),   # M = 15 -> single block with tm == M (not mult of 8)
        (2, 3, 18, 20, 32),   # M = 54 -> multi-step grid with a ragged last block
    ]
    for (B, D, H, W, C) in configs:
        key, k_x, k_g, k_b, k_w = jax.random.split(key, 5)
        x = jax.random.normal(k_x, (B, D, H, W, C), dtype=jnp.float32) + 0.5
        gamma = 1.0 + 0.02 * jax.random.normal(k_g, (4 * C,), dtype=jnp.float32)
        beta = 0.02 * jax.random.normal(k_b, (4 * C,), dtype=jnp.float32)
        w_red = 0.02 * jax.random.normal(k_w, (2 * C, 4 * C), dtype=jnp.float32)

        out = jax.block_until_ready(patch_merging_forward(x, gamma, beta, w_red))
        ref = _reference(x, gamma, beta, w_red)

        Ho, Wo = (H + 1) // 2, (W + 1) // 2
        assert out.shape == (B, D, Ho, Wo, 2 * C), (out.shape, (B, D, Ho, Wo, 2 * C))
        err = float(jnp.max(jnp.abs(out.astype(jnp.float32) - ref.astype(jnp.float32))))
        assert err < 2e-2, ((B, D, H, W, C), err)

    print("KERNEL_OK")
</pallas_src>

<mosaic_0001>
module attributes {stable_mosaic.version = 11 : i64} {
  func.func @_patch_merging_kernel(%arg0: i32, %arg1: memref<8x1024xf32, #tpu.memory_space<vmem>>, %arg2: memref<128x128xf32, #tpu.memory_space<vmem>>, %arg3: memref<128x128xf32, #tpu.memory_space<vmem>>, %arg4: memref<1x128xf32, #tpu.memory_space<vmem>>, %arg5: memref<1x128xf32, #tpu.memory_space<vmem>>, %arg6: memref<8x512xf32, #tpu.memory_space<vmem>>) attributes {dimension_semantics = [#tpu.dimension_semantics<parallel>], iteration_bounds = array<i64: 2>, scalar_prefetch = 0 : i64, scratch_operands = 0 : i64, tpu.core_type = #tpu.core_type<tc>, window_params = [{transform_indices = @transform_0, window_bounds = array<i64: 8, 1024>}, {pipeline_mode = #tpu.pipeline_mode<synchronous>, transform_indices = @transform_1, window_bounds = array<i64: 128, 128>}, {pipeline_mode = #tpu.pipeline_mode<synchronous>, transform_indices = @transform_2, window_bounds = array<i64: 128, 128>}, {pipeline_mode = #tpu.pipeline_mode<synchronous>, transform_indices = @transform_3, window_bounds = array<i64: 1, 128>}, {pipeline_mode = #tpu.pipeline_mode<synchronous>, transform_indices = @transform_4, window_bounds = array<i64: 1, 128>}, {transform_indices = @transform_5, window_bounds = array<i64: 8, 512>}]} {
    %c0 = arith.constant 0 : index
    %c0_0 = arith.constant 0 : index
    %0 = vector.load %arg2[%c0, %c0_0] : memref<128x128xf32, #tpu.memory_space<vmem>>, vector<128x128xf32>
    %c0_1 = arith.constant 0 : index
    %c0_2 = arith.constant 0 : index
    %1 = vector.load %arg3[%c0_1, %c0_2] : memref<128x128xf32, #tpu.memory_space<vmem>>, vector<128x128xf32>
    %c0_3 = arith.constant 0 : index
    %c0_4 = arith.constant 0 : index
    %2 = vector.load %arg4[%c0_3, %c0_4] : memref<1x128xf32, #tpu.memory_space<vmem>>, vector<1x128xf32>
    %c0_5 = arith.constant 0 : index
    %c0_6 = arith.constant 0 : index
    %3 = vector.load %arg5[%c0_5, %c0_6] : memref<1x128xf32, #tpu.memory_space<vmem>>, vector<1x128xf32>
    %c0_7 = arith.constant 0 : index
    %c0_8 = arith.constant 0 : index
    %4 = vector.load %arg1[%c0_7, %c0_8] : memref<8x1024xf32, #tpu.memory_space<vmem>>, vector<8x128xf32>
    %c0_9 = arith.constant 0 : index
    %c512 = arith.constant 512 : index
    %5 = vector.load %arg1[%c0_9, %c512] : memref<8x1024xf32, #tpu.memory_space<vmem>>, vector<8x128xf32>
    %cst = arith.constant dense<0.000000e+00> : vector<8xf32>
    %6 = vector.multi_reduction <add>, %4, %cst [1] : vector<8x128xf32> to vector<8xf32>
    %7 = vector.shape_cast %6 : vector<8xf32> to vector<8x1xf32>
    %cst_10 = arith.constant dense<0.000000e+00> : vector<8xf32>
    %8 = vector.multi_reduction <add>, %5, %cst_10 [1] : vector<8x128xf32> to vector<8xf32>
    %9 = vector.shape_cast %8 : vector<8xf32> to vector<8x1xf32>
    %10 = arith.addf %7, %9 : vector<8x1xf32>
    %11 = arith.mulf %4, %4 : vector<8x128xf32>
    %cst_11 = arith.constant dense<0.000000e+00> : vector<8xf32>
    %12 = vector.multi_reduction <add>, %11, %cst_11 [1] : vector<8x128xf32> to vector<8xf32>
    %13 = vector.shape_cast %12 : vector<8xf32> to vector<8x1xf32>
    %14 = arith.mulf %5, %5 : vector<8x128xf32>
    %cst_12 = arith.constant dense<0.000000e+00> : vector<8xf32>
    %15 = vector.multi_reduction <add>, %14, %cst_12 [1] : vector<8x128xf32> to vector<8xf32>
    %16 = vector.shape_cast %15 : vector<8xf32> to vector<8x1xf32>
    %17 = arith.addf %13, %16 : vector<8x1xf32>
    %cst_13 = arith.constant 3.906250e-03 : f32
    %18 = vector.broadcast %cst_13 : f32 to vector<8x1xf32>
    %19 = arith.mulf %10, %18 : vector<8x1xf32>
    %cst_14 = arith.constant 3.906250e-03 : f32
    %20 = vector.broadcast %cst_14 : f32 to vector<8x1xf32>
    %21 = arith.mulf %17, %20 : vector<8x1xf32>
    %22 = arith.mulf %19, %19 : vector<8x1xf32>
    %23 = arith.subf %21, %22 : vector<8x1xf32>
    %cst_15 = arith.constant 0.000000e+00 : f32
    %24 = vector.broadcast %cst_15 : f32 to vector<8x1xf32>
    %25 = arith.maximumf %23, %24 : vector<8x1xf32>
    %cst_16 = arith.constant 9.99999974E-6 : f32
    %26 = vector.broadcast %cst_16 : f32 to vector<8x1xf32>
    %27 = arith.addf %25, %26 : vector<8x1xf32>
    %28 = math.rsqrt %27 : vector<8x1xf32>
    %cst_17 = arith.constant dense<0.000000e+00> : vector<8x128xf32>
    %29 = tpu.matmul %4, %0, %cst_17 {dimension_numbers = #tpu.dot_dimension_numbers<[1], [0], [0], [1], [0, 0, 1, 1], [], []>} : vector<8x128xf32>, vector<128x128xf32>, vector<8x128xf32> -> vector<8x128xf32>
    %cst_18 = arith.constant dense<0.000000e+00> : vector<8x128xf32>
    %30 = tpu.matmul %5, %1, %cst_18 {dimension_numbers = #tpu.dot_dimension_numbers<[1], [0], [0], [1], [0, 0, 1, 1], [], []>} : vector<8x128xf32>, vector<128x128xf32>, vector<8x128xf32> -> vector<8x128xf32>
    %31 = arith.addf %29, %30 : vector<8x128xf32>
    %32 = vector.broadcast %19 : vector<8x1xf32> to vector<8x128xf32>
    %33 = vector.broadcast %2 : vector<1x128xf32> to vector<8x128xf32>
    %34 = arith.mulf %32, %33 : vector<8x128xf32>
    %35 = arith.subf %31, %34 : vector<8x128xf32>
    %36 = vector.broadcast %28 : vector<8x1xf32> to vector<8x128xf32>
    %37 = arith.mulf %36, %35 : vector<8x128xf32>
    %38 = vector.broadcast %3 : vector<1x128xf32> to vector<8x128xf32>
    %39 = arith.addf %37, %38 : vector<8x128xf32>
    %c0_19 = arith.constant 0 : index
    %c0_20 = arith.constant 0 : index
    %40 = vector.load %arg6[%c0_19, %c0_20] : memref<8x512xf32, #tpu.memory_space<vmem>>, vector<8x128xf32>
    tpu.vector_store %arg6[%c0_19, %c0_20], %39 {strides = array<i32>} : memref<8x512xf32, #tpu.memory_space<vmem>>, vector<8x128xf32>,
    %c0_21 = arith.constant 0 : index
    %c128 = arith.constant 128 : index
    %41 = vector.load %arg1[%c0_21, %c128] : memref<8x1024xf32, #tpu.memory_space<vmem>>, vector<8x128xf32>
    %c0_22 = arith.constant 0 : index
    %c640 = arith.constant 640 : index
    %42 = vector.load %arg1[%c0_22, %c640] : memref<8x1024xf32, #tpu.memory_space<vmem>>, vector<8x128xf32>
    %cst_23 = arith.constant dense<0.000000e+00> : vector<8xf32>
    %43 = vector.multi_reduction <add>, %41, %cst_23 [1] : vector<8x128xf32> to vector<8xf32>
    %44 = vector.shape_cast %43 : vector<8xf32> to vector<8x1xf32>
    %cst_24 = arith.constant dense<0.000000e+00> : vector<8xf32>
    %45 = vector.multi_reduction <add>, %42, %cst_24 [1] : vector<8x128xf32> to vector<8xf32>
    %46 = vector.shape_cast %45 : vector<8xf32> to vector<8x1xf32>
    %47 = arith.addf %44, %46 : vector<8x1xf32>
    %48 = arith.mulf %41, %41 : vector<8x128xf32>
    %cst_25 = arith.constant dense<0.000000e+00> : vector<8xf32>
    %49 = vector.multi_reduction <add>, %48, %cst_25 [1] : vector<8x128xf32> to vector<8xf32>
    %50 = vector.shape_cast %49 : vector<8xf32> to vector<8x1xf32>
    %51 = arith.mulf %42, %42 : vector<8x128xf32>
    %cst_26 = arith.constant dense<0.000000e+00> : vector<8xf32>
    %52 = vector.multi_reduction <add>, %51, %cst_26 [1] : vector<8x128xf32> to vector<8xf32>
    %53 = vector.shape_cast %52 : vector<8xf32> to vector<8x1xf32>
    %54 = arith.addf %50, %53 : vector<8x1xf32>
    %cst_27 = arith.constant 3.906250e-03 : f32
    %55 = vector.broadcast %cst_27 : f32 to vector<8x1xf32>
    %56 = arith.mulf %47, %55 : vector<8x1xf32>
    %cst_28 = arith.constant 3.906250e-03 : f32
    %57 = vector.broadcast %cst_28 : f32 to vector<8x1xf32>
    %58 = arith.mulf %54, %57 : vector<8x1xf32>
    %59 = arith.mulf %56, %56 : vector<8x1xf32>
    %60 = arith.subf %58, %59 : vector<8x1xf32>
    %cst_29 = arith.constant 0.000000e+00 : f32
    %61 = vector.broadcast %cst_29 : f32 to vector<8x1xf32>
    %62 = arith.maximumf %60, %61 : vector<8x1xf32>
    %cst_30 = arith.constant 9.99999974E-6 : f32
    %63 = vector.broadcast %cst_30 : f32 to vector<8x1xf32>
    %64 = arith.addf %62, %63 : vector<8x1xf32>
    %65 = math.rsqrt %64 : vector<8x1xf32>
    %cst_31 = arith.constant dense<0.000000e+00> : vector<8x128xf32>
    %66 = tpu.matmul %41, %0, %cst_31 {dimension_numbers = #tpu.dot_dimension_numbers<[1], [0], [0], [1], [0, 0, 1, 1], [], []>} : vector<8x128xf32>, vector<128x128xf32>, vector<8x128xf32> -> vector<8x128xf32>
    %cst_32 = arith.constant dense<0.000000e+00> : vector<8x128xf32>
    %67 = tpu.matmul %42, %1, %cst_32 {dimension_numbers = #tpu.dot_dimension_numbers<[1], [0], [0], [1], [0, 0, 1, 1], [], []>} : vector<8x128xf32>, vector<128x128xf32>, vector<8x128xf32> -> vector<8x128xf32>
    %68 = arith.addf %66, %67 : vector<8x128xf32>
    %69 = vector.broadcast %56 : vector<8x1xf32> to vector<8x128xf32>
    %70 = vector.broadcast %2 : vector<1x128xf32> to vector<8x128xf32>
    %71 = arith.mulf %69, %70 : vector<8x128xf32>
    %72 = arith.subf %68, %71 : vector<8x128xf32>
    %73 = vector.broadcast %65 : vector<8x1xf32> to vector<8x128xf32>
    %74 = arith.mulf %73, %72 : vector<8x128xf32>
    %75 = vector.broadcast %3 : vector<1x128xf32> to vector<8x128xf32>
    %76 = arith.addf %74, %75 : vector<8x128xf32>
    %c0_33 = arith.constant 0 : index
    %c128_34 = arith.constant 128 : index
    %77 = vector.load %arg6[%c0_33, %c128_34] : memref<8x512xf32, #tpu.memory_space<vmem>>, vector<8x128xf32>
    tpu.vector_store %arg6[%c0_33, %c128_34], %76 {strides = array<i32>} : memref<8x512xf32, #tpu.memory_space<vmem>>, vector<8x128xf32>,
    %c0_35 = arith.constant 0 : index
    %c256 = arith.constant 256 : index
    %78 = vector.load %arg1[%c0_35, %c256] : memref<8x1024xf32, #tpu.memory_space<vmem>>, vector<8x128xf32>
    %c0_36 = arith.constant 0 : index
    %c768 = arith.constant 768 : index
    %79 = vector.load %arg1[%c0_36, %c768] : memref<8x1024xf32, #tpu.memory_space<vmem>>, vector<8x128xf32>
    %cst_37 = arith.constant dense<0.000000e+00> : vector<8xf32>
    %80 = vector.multi_reduction <add>, %78, %cst_37 [1] : vector<8x128xf32> to vector<8xf32>
    %81 = vector.shape_cast %80 : vector<8xf32> to vector<8x1xf32>
    %cst_38 = arith.constant dense<0.000000e+00> : vector<8xf32>
    %82 = vector.multi_reduction <add>, %79, %cst_38 [1] : vector<8x128xf32> to vector<8xf32>
    %83 = vector.shape_cast %82 : vector<8xf32> to vector<8x1xf32>
    %84 = arith.addf %81, %83 : vector<8x1xf32>
    %85 = arith.mulf %78, %78 : vector<8x128xf32>
    %cst_39 = arith.constant dense<0.000000e+00> : vector<8xf32>
    %86 = vector.multi_reduction <add>, %85, %cst_39 [1] : vector<8x128xf32> to vector<8xf32>
    %87 = vector.shape_cast %86 : vector<8xf32> to vector<8x1xf32>
    %88 = arith.mulf %79, %79 : vector<8x128xf32>
    %cst_40 = arith.constant dense<0.000000e+00> : vector<8xf32>
    %89 = vector.multi_reduction <add>, %88, %cst_40 [1] : vector<8x128xf32> to vector<8xf32>
    %90 = vector.shape_cast %89 : vector<8xf32> to vector<8x1xf32>
    %91 = arith.addf %87, %90 : vector<8x1xf32>
    %cst_41 = arith.constant 3.906250e-03 : f32
    %92 = vector.broadcast %cst_41 : f32 to vector<8x1xf32>
    %93 = arith.mulf %84, %92 : vector<8x1xf32>
    %cst_42 = arith.constant 3.906250e-03 : f32
    %94 = vector.broadcast %cst_42 : f32 to vector<8x1xf32>
    %95 = arith.mulf %91, %94 : vector<8x1xf32>
    %96 = arith.mulf %93, %93 : vector<8x1xf32>
    %97 = arith.subf %95, %96 : vector<8x1xf32>
    %cst_43 = arith.constant 0.000000e+00 : f32
    %98 = vector.broadcast %cst_43 : f32 to vector<8x1xf32>
    %99 = arith.maximumf %97, %98 : vector<8x1xf32>
    %cst_44 = arith.constant 9.99999974E-6 : f32
    %100 = vector.broadcast %cst_44 : f32 to vector<8x1xf32>
    %101 = arith.addf %99, %100 : vector<8x1xf32>
    %102 = math.rsqrt %101 : vector<8x1xf32>
    %cst_45 = arith.constant dense<0.000000e+00> : vector<8x128xf32>
    %103 = tpu.matmul %78, %0, %cst_45 {dimension_numbers = #tpu.dot_dimension_numbers<[1], [0], [0], [1], [0, 0, 1, 1], [], []>} : vector<8x128xf32>, vector<128x128xf32>, vector<8x128xf32> -> vector<8x128xf32>
    %cst_46 = arith.constant dense<0.000000e+00> : vector<8x128xf32>
    %104 = tpu.matmul %79, %1, %cst_46 {dimension_numbers = #tpu.dot_dimension_numbers<[1], [0], [0], [1], [0, 0, 1, 1], [], []>} : vector<8x128xf32>, vector<128x128xf32>, vector<8x128xf32> -> vector<8x128xf32>
    %105 = arith.addf %103, %104 : vector<8x128xf32>
    %106 = vector.broadcast %93 : vector<8x1xf32> to vector<8x128xf32>
    %107 = vector.broadcast %2 : vector<1x128xf32> to vector<8x128xf32>
    %108 = arith.mulf %106, %107 : vector<8x128xf32>
    %109 = arith.subf %105, %108 : vector<8x128xf32>
    %110 = vector.broadcast %102 : vector<8x1xf32> to vector<8x128xf32>
    %111 = arith.mulf %110, %109 : vector<8x128xf32>
    %112 = vector.broadcast %3 : vector<1x128xf32> to vector<8x128xf32>
    %113 = arith.addf %111, %112 : vector<8x128xf32>
    %c0_47 = arith.constant 0 : index
    %c256_48 = arith.constant 256 : index
    %114 = vector.load %arg6[%c0_47, %c256_48] : memref<8x512xf32, #tpu.memory_space<vmem>>, vector<8x128xf32>
    tpu.vector_store %arg6[%c0_47, %c256_48], %113 {strides = array<i32>} : memref<8x512xf32, #tpu.memory_space<vmem>>, vector<8x128xf32>,
    %c0_49 = arith.constant 0 : index
    %c384 = arith.constant 384 : index
    %115 = vector.load %arg1[%c0_49, %c384] : memref<8x1024xf32, #tpu.memory_space<vmem>>, vector<8x128xf32>
    %c0_50 = arith.constant 0 : index
    %c896 = arith.constant 896 : index
    %116 = vector.load %arg1[%c0_50, %c896] : memref<8x1024xf32, #tpu.memory_space<vmem>>, vector<8x128xf32>
    %cst_51 = arith.constant dense<0.000000e+00> : vector<8xf32>
    %117 = vector.multi_reduction <add>, %115, %cst_51 [1] : vector<8x128xf32> to vector<8xf32>
    %118 = vector.shape_cast %117 : vector<8xf32> to vector<8x1xf32>
    %cst_52 = arith.constant dense<0.000000e+00> : vector<8xf32>
    %119 = vector.multi_reduction <add>, %116, %cst_52 [1] : vector<8x128xf32> to vector<8xf32>
    %120 = vector.shape_cast %119 : vector<8xf32> to vector<8x1xf32>
    %121 = arith.addf %118, %120 : vector<8x1xf32>
    %122 = arith.mulf %115, %115 : vector<8x128xf32>
    %cst_53 = arith.constant dense<0.000000e+00> : vector<8xf32>
    %123 = vector.multi_reduction <add>, %122, %cst_53 [1] : vector<8x128xf32> to vector<8xf32>
    %124 = vector.shape_cast %123 : vector<8xf32> to vector<8x1xf32>
    %125 = arith.mulf %116, %116 : vector<8x128xf32>
    %cst_54 = arith.constant dense<0.000000e+00> : vector<8xf32>
    %126 = vector.multi_reduction <add>, %125, %cst_54 [1] : vector<8x128xf32> to vector<8xf32>
    %127 = vector.shape_cast %126 : vector<8xf32> to vector<8x1xf32>
    %128 = arith.addf %124, %127 : vector<8x1xf32>
    %cst_55 = arith.constant 3.906250e-03 : f32
    %129 = vector.broadcast %cst_55 : f32 to vector<8x1xf32>
    %130 = arith.mulf %121, %129 : vector<8x1xf32>
    %cst_56 = arith.constant 3.906250e-03 : f32
    %131 = vector.broadcast %cst_56 : f32 to vector<8x1xf32>
    %132 = arith.mulf %128, %131 : vector<8x1xf32>
    %133 = arith.mulf %130, %130 : vector<8x1xf32>
    %134 = arith.subf %132, %133 : vector<8x1xf32>
    %cst_57 = arith.constant 0.000000e+00 : f32
    %135 = vector.broadcast %cst_57 : f32 to vector<8x1xf32>
    %136 = arith.maximumf %134, %135 : vector<8x1xf32>
    %cst_58 = arith.constant 9.99999974E-6 : f32
    %137 = vector.broadcast %cst_58 : f32 to vector<8x1xf32>
    %138 = arith.addf %136, %137 : vector<8x1xf32>
    %139 = math.rsqrt %138 : vector<8x1xf32>
    %cst_59 = arith.constant dense<0.000000e+00> : vector<8x128xf32>
    %140 = tpu.matmul %115, %0, %cst_59 {dimension_numbers = #tpu.dot_dimension_numbers<[1], [0], [0], [1], [0, 0, 1, 1], [], []>} : vector<8x128xf32>, vector<128x128xf32>, vector<8x128xf32> -> vector<8x128xf32>
    %cst_60 = arith.constant dense<0.000000e+00> : vector<8x128xf32>
    %141 = tpu.matmul %116, %1, %cst_60 {dimension_numbers = #tpu.dot_dimension_numbers<[1], [0], [0], [1], [0, 0, 1, 1], [], []>} : vector<8x128xf32>, vector<128x128xf32>, vector<8x128xf32> -> vector<8x128xf32>
    %142 = arith.addf %140, %141 : vector<8x128xf32>
    %143 = vector.broadcast %130 : vector<8x1xf32> to vector<8x128xf32>
    %144 = vector.broadcast %2 : vector<1x128xf32> to vector<8x128xf32>
    %145 = arith.mulf %143, %144 : vector<8x128xf32>
    %146 = arith.subf %142, %145 : vector<8x128xf32>
    %147 = vector.broadcast %139 : vector<8x1xf32> to vector<8x128xf32>
    %148 = arith.mulf %147, %146 : vector<8x128xf32>
    %149 = vector.broadcast %3 : vector<1x128xf32> to vector<8x128xf32>
    %150 = arith.addf %148, %149 : vector<8x128xf32>
    %c0_61 = arith.constant 0 : index
    %c384_62 = arith.constant 384 : index
    %151 = vector.load %arg6[%c0_61, %c384_62] : memref<8x512xf32, #tpu.memory_space<vmem>>, vector<8x128xf32>
    tpu.vector_store %arg6[%c0_61, %c384_62], %150 {strides = array<i32>} : memref<8x512xf32, #tpu.memory_space<vmem>>, vector<8x128xf32>,
    return
  }
  func.func @transform_0(%arg0: i32) -> (i32, i32) {
    %c0_i32 = arith.constant 0 : i32
    %c0_i32_0 = arith.constant 0 : i32
    return %arg0, %c0_i32 : i32, i32
  }
  func.func @transform_1(%arg0: i32) -> (i32, i32) {
    %c0_i32 = arith.constant 0 : i32
    %c0_i32_0 = arith.constant 0 : i32
    %c0_i32_1 = arith.constant 0 : i32
    return %c0_i32, %c0_i32_0 : i32, i32
  }
  func.func @transform_2(%arg0: i32) -> (i32, i32) {
    %c0_i32 = arith.constant 0 : i32
    %c0_i32_0 = arith.constant 0 : i32
    %c0_i32_1 = arith.constant 0 : i32
    return %c0_i32, %c0_i32_0 : i32, i32
  }
  func.func @transform_3(%arg0: i32) -> (i32, i32) {
    %c0_i32 = arith.constant 0 : i32
    %c0_i32_0 = arith.constant 0 : i32
    %c0_i32_1 = arith.constant 0 : i32
    return %c0_i32, %c0_i32_0 : i32, i32
  }
  func.func @transform_4(%arg0: i32) -> (i32, i32) {
    %c0_i32 = arith.constant 0 : i32
    %c0_i32_0 = arith.constant 0 : i32
    %c0_i32_1 = arith.constant 0 : i32
    return %c0_i32, %c0_i32_0 : i32, i32
  }
  func.func @transform_5(%arg0: i32) -> (i32, i32) {
    %c0_i32 = arith.constant 0 : i32
    %c0_i32_0 = arith.constant 0 : i32
    return %arg0, %c0_i32 : i32, i32
  }
}

</mosaic_0001>

<bundles_post_ra>
// kernel: tpu_custom_call.1
= control target key start
LH: loop header
LB: loop body
LE: loop exit
PB: predicated region body
PF: predicated region fallthrough
CT: control target
= control target key end

     0   :  { %10 = vsyncpa [#allocation3], 0  ;;  %s2652_s0 = inlined_call_operand.hbm [shape: f32[16,1024], index: 0, kind: input, shape index: {}]   ;;  %s2653_s1 = inlined_call_operand.hbm [shape: f32[128,128], index: 1, kind: input, shape index: {}]   ;;  %s2654_s2 = inlined_call_operand.hbm [shape: f32[128,128], index: 2, kind: input, shape index: {}]   ;;  %s2655_s3 = inlined_call_operand.hbm [shape: f32[1,128], index: 3, kind: input, shape index: {}]   ;;  %s2656_s4 = inlined_call_operand.hbm [shape: f32[1,128], index: 4, kind: input, shape index: {}]   ;;  %s2657_s5 = inlined_call_operand.hbm [shape: f32[16,512], index: 5, kind: output, shape index: {}]  }
   0x1   :  { %12 = vsyncpa [#allocation3 + $0x1], 0 }
   0x2   :  { %13 = vsyncpa [#allocation6], 0 }
   0x3   :  { %14 = vsyncpa [#allocation9], 0 }
   0x4   :  { %15 = vsyncpa [#allocation4], 0 }
   0x5   :  { %17 = vsyncpa [#allocation4 + $0x1], 0  ;;  %s2129_s18 = smov 0   ;;  %s2131_s19 = smov 0  }
   0x6   :  { %s2133_s20 = smov 0   ;;  %s2135_s21 = smov 0  }
   0x7 LB: > { %s2088_s22 = smov [#allocation5]   ;;  %s2150_s24 = sadd.s32 4294967295, %s2086_s21   ;;  %s2086_s21 = sphi %s2135_s21, %s2681_s21   ;;  %s2082_s20 = sphi %s2133_s20, %s2680_s20   ;;  %s2078_s19 = sphi %s2131_s19, %s2679_s19   ;;  %s2074_s18 = sphi %s2129_s18, %s2678_s18  }
   0x8   : > { %s176_s23 = sshll.u32 %s2088_s22, 4  ;;  %p1129_p0 = scmp.ge.s32.totalorder %s2086_s21, 1  ;;  %s2155_s23 = int_to_ptr.vmem [resolvable:$true] %s176_s23 }
   0x9   : > { %p2658_p1 = scmp.eq.s32.totalorder %s2150_s24, 0  ;;  %p164_p2 = scmp.lt.s32.totalorder %s2086_s21, 3 }
   0xa   : > { %s2089_s26 = smov [#allocation8]   ;;  %s2090_s29 = smov [#allocation7]  }
   0xb   : > { %p2157_p3 = pnand %p1129_p0, %p164_p2  ;;  %s203_s27 = sshll.u32 %s2089_s26, 4  ;;  %s2170_s27 = int_to_ptr.vmem [resolvable:$true] %s203_s27 }
   0xc   : > { %s189_s30 = sshll.u32 %s2090_s29, 4  ;;  %s1870_s8 = scalar_lea.hbm %s2653_s1, 2048  ;;  %s2172_s30 = int_to_ptr.vmem [resolvable:$true] %s189_s30 }
   0xd   : > { %s2661_s25 = scalar_select %p2157_p3, 1, 0 }
   0xe   : > { %p1790_p5 = pneg %p2157_p3  ;;  %p1871_p7 = scmp.ne.s32.totalorder %s2653_s1, %s1870_s8 }
   0xf   : > { %p1877_p11 = scmp.lt.u32.totalorder %s1870_s8, %s2653_s1 }
  0x10   : > { %p2166_p6 = pnand %p1790_p5, %p2658_p1 }
  0x12   : > { %p2182_p8 = pneg %p2166_p6 }
  0x14   : > { %p1873_p9 = pnand %p2182_p8, %p1871_p7 }
  0x16   : > { %p1874_p10 = pneg %p1873_p9 }
  0x18   : > { %p1879_p12 = pnand %p1877_p11, %p1874_p10 }
  0x1a   : > { %1882 = shalt.err (!%p1879_p12)
}
  0x1b   : > { %s1883_s14 = scalar_lea.vmem %s2155_s23, 2048  ;;  %p1891_p5 = scmp.lt.s32.totalorder %s2155_s23, %s2155_s23 }
  0x1c   : > { %p1884_p13 = scmp.ne.s32.totalorder %s2155_s23, %s1883_s14  ;;  %p1892_p4 = scmp.lt.s32.totalorder %s1883_s14, %s1883_s14 }
  0x1e   : > { %p1886_p0 = pnand %p1884_p13, %p2182_p8  ;;  %p1893_p7 = por %p1892_p4, %p1891_p5 }
  0x20   : > { %p1887_p2 = pneg %p1886_p0 }
  0x22   : > { %p1894_p9 = pnand %p1893_p7, %p1887_p2 }
  0x24   : > { %1897 = shalt.err (!%p1894_p9)
}
  0x25   : > { %s2091_s15 = smov 128   ;;  %s2092_s16 = smov 8  }
  0x26   : > { %1793 = dma.hbm_to_vmem [thread:$0]  (!%p2166_p6), %s2653_s1, 2048, %s2155_s23, [#allocation6], %s2091_s15, %s2091_s15, %s2092_s16  }
  0x27   : > { %s1898_s6 = scalar_lea.hbm %s2655_s3, 16 }
  0x28   : > { %p1899_p4 = scmp.ne.s32.totalorder %s2655_s3, %s1898_s6  ;;  %p1905_p12 = scmp.lt.u32.totalorder %s1898_s6, %s2655_s3 }
  0x2a   : > { %p1901_p10 = pnand %p1899_p4, %p2182_p8 }
  0x2c   : > { %p1902_p11 = pneg %p1901_p10 }
  0x2e   : > { %p1907_p13 = pnand %p1905_p12, %p1902_p11 }
  0x30   : > { %1910 = shalt.err (!%p1907_p13)
}
  0x31   : > { %s1911_s23 = scalar_lea.vmem %s2170_s27, 16  ;;  %s1918_s12 = scalar_lea.vmem %s2170_s27, 32 }
  0x32   : > { %p1912_p0 = scmp.ne.s32.totalorder %s2170_s27, %s1911_s23  ;;  %p1919_p7 = scmp.lt.s32.totalorder %s2170_s27, %s2170_s27 }
  0x33   : > { %p1920_p9 = scmp.lt.s32.totalorder %s1918_s12, %s1911_s23 }
  0x34   : > { %p1914_p2 = pnand %p1912_p0, %p2182_p8 }
  0x35   : > { %p1921_p4 = por %p1920_p9, %p1919_p7 }
  0x36   : > { %p1915_p5 = pneg %p1914_p2 }
  0x38   : > { %p1922_p10 = pnand %p1921_p4, %p1915_p5 }
  0x3a   : > { %1925 = shalt.err (!%p1922_p10)
}
  0x3b   : > { %1799 = dma.hbm_to_vmem [thread:$0]  (!%p2166_p6), %s2655_s3, 16, %s2170_s27, [#allocation9]  }
  0x3c   : > { %s1926_s26 = scalar_lea.hbm %s2654_s2, 2048 }
  0x3d   : > { %p1927_p11 = scmp.ne.s32.totalorder %s2654_s2, %s1926_s26  ;;  %p1933_p0 = scmp.lt.u32.totalorder %s1926_s26, %s2654_s2 }
  0x3f   : > { %p1929_p12 = pnand %p1927_p11, %p2182_p8 }
  0x41   : > { %p1930_p13 = pneg %p1929_p12 }
  0x43   : > { %p1935_p2 = pnand %p1933_p0, %p1930_p13 }
  0x45   : > { %1938 = shalt.err (!%p1935_p2)
}
  0x46   : > { %s1939_s27 = scalar_lea.vmem %s2172_s30, 2048  ;;  %p1947_p4 = scmp.lt.s32.totalorder %s2172_s30, %s2172_s30 }
  0x47   : > { %p1940_p5 = scmp.ne.s32.totalorder %s2172_s30, %s1939_s27  ;;  %p1948_p10 = scmp.lt.s32.totalorder %s1939_s27, %s1939_s27 }
  0x49   : > { %p1942_p7 = pnand %p1940_p5, %p2182_p8  ;;  %p1949_p11 = por %p1948_p10, %p1947_p4 }
  0x4b   : > { %p1943_p9 = pneg %p1942_p7 }
  0x4d   : > { %p1950_p12 = pnand %p1949_p11, %p1943_p9 }
  0x4f   : > { %1953 = shalt.err (!%p1950_p12)
}
  0x50   : > { %1796 = dma.hbm_to_vmem [thread:$0]  (!%p2166_p6), %s2654_s2, 2048, %s2172_s30, [#allocation6], %s2091_s15, %s2091_s15, %s2092_s16  }
  0x51   : > { %s2093_s23 = smov [#allocation10]   ;;  %s1954_s17 = scalar_lea.hbm %s2656_s4, 16 }
  0x52   : > { %s214_s12 = sshll.u32 %s2093_s23, 4  ;;  %p1955_p13 = scmp.ne.s32.totalorder %s2656_s4, %s1954_s17  ;;  %s215_s12 = int_to_ptr.vmem [resolvable:$true] %s214_s12 }
  0x53   : > { %p1961_p5 = scmp.lt.u32.totalorder %s1954_s17, %s2656_s4 }
  0x54   : > { %p1957_p0 = pnand %p1955_p13, %p2182_p8 }
  0x56   : > { %p1958_p2 = pneg %p1957_p0 }
  0x58   : > { %p1963_p7 = pnand %p1961_p5, %p1958_p2 }
  0x5a   : > { %1966 = shalt.err (!%p1963_p7)
}
  0x5b   : > { %s1967_s30 = scalar_lea.vmem %s215_s12, 16  ;;  %s1974_s15 = scalar_lea.vmem %s215_s12, 32 }
  0x5c   : > { %p1968_p9 = scmp.ne.s32.totalorder %s215_s12, %s1967_s30  ;;  %p1975_p11 = scmp.lt.s32.totalorder %s215_s12, %s215_s12 }
  0x5d   : > { %p1976_p12 = scmp.lt.s32.totalorder %s1974_s15, %s1967_s30 }
  0x5e   : > { %p1970_p4 = pnand %p1968_p9, %p2182_p8 }
  0x5f   : > { %p1977_p1 = por %p1976_p12, %p1975_p11 }
  0x60   : > { %p1971_p10 = pneg %p1970_p4 }
  0x62   : > { %p1978_p3 = pnand %p1977_p1, %p1971_p10 }
  0x64   : > { %1981 = shalt.err (!%p1978_p3)
}
  0x65   : > { %1802 = dma.hbm_to_vmem [thread:$0]  (!%p2166_p6), %s2656_s4, 16, %s215_s12, [#allocation9]  }
  0x66   : > { %s1128_s11 = sadd.s32 4294967294, %s2086_s21   ;;  %s2276_s28 = sadd.s32 1, %s2086_s21  }
  0x67   : > { %s27_s8 = ssub.s32 %s2086_s21, %s2276_s28  ;;  %s30_s27 = sadd.s32 1, %s2082_s20 }
  0x68   : > { %p28_p1 = scmp.eq.s32.totalorder %s27_s8, 0  ;;  %p37_p3 = scmp.ne.s32.totalorder %s2082_s20, %s2078_s19 }
  0x69   : > { %p38_p8 = scmp.eq.s32.totalorder %s2086_s21, 0  ;;  %p43_p13 = scmp.ne.s32.totalorder %s2078_s19, %s2074_s18 }
  0x6a   : > { %s2287_s9 = scalar_select %p28_p1, %s2082_s20, %s30_s27  }
  0x6b   : > { %p2289_p0 = por %p38_p8, %p37_p3  ;;  %p2665_p2 = scmp.eq.s32.totalorder %s2150_s24, 0 }
  0x6c   : > { %p151_p5 = scmp.eq.s32.totalorder %s2150_s24, 1  ;;  %p157_p7 = scmp.eq.s32.totalorder %s1128_s11, 1 }
  0x6d   : > { %p2295_p6 = por %p2665_p2, %p43_p13  ;;  %p1815_p9 = scmp.lt.s32.totalorder %s2086_s21, 2 }
  0x6e   : > { %s225_s12 = sand.u32 1, %s2082_s20   ;;  %p2302_p4 = por %p151_p5, %p37_p3 }
  0x6f   : > { %p2306_p10 = por %p157_p7, %p43_p13  ;;  %s1135_s17 = sshll.u32 %s225_s12, 6 }
  0x70   : > { %s2667_s13 = scalar_select %p2302_p4, 1, 0 }
  0x71   : > { %s2668_s14 = scalar_select %p2306_p10, 1, 0 }
  0x72   : > { %s1152_s22 = sshll.u32 %s2086_s21, 10  ;;  %s229_s30 = scalar_lea.vmem [#allocation2], %s1135_s17 }
  0x73   : > { %s2314_s6 = scalar_lea.hbm %s2652_s0, %s1152_s22  ;;  %s237_s15 = sshll.u32 %s229_s30, 4  ;;  %s2316_s15 = int_to_ptr.vmem [resolvable:$true] %s237_s15 }
  0x74   : > { %p2320_p11 = pnand %p1815_p9, %p2289_p0  ;;  %s226_s7 = scalar_lea.sflag [#allocation3], %s225_s12 }
  0x75   : > { %s1982_s11 = scalar_lea.hbm %s2314_s6, 1024  ;;  %s1987_s17 = scalar_lea.hbm %s2652_s0, 2048 }
  0x76   : > { %p1983_p12 = scmp.ne.s32.totalorder %s2314_s6, %s1982_s11  ;;  %p1984_p1 = pneg %p2320_p11 }
  0x77   : > { %p1988_p13 = scmp.lt.u32.totalorder %s2314_s6, %s2652_s0  ;;  %p1989_p0 = scmp.lt.u32.totalorder %s1987_s17, %s1982_s11 }
  0x78   : > { %p1985_p3 = pnand %p1984_p1, %p1983_p12  ;;  %p1991_p5 = scmp.lt.u32.totalorder %s1982_s11, %s2314_s6 }
  0x79   : > { %p1990_p2 = por %p1989_p0, %p1988_p13 }
  0x7a   : > { %p1986_p8 = pneg %p1985_p3 }
  0x7b   : > { %p1992_p7 = por %p1991_p5, %p1990_p2 }
  0x7d   : > { %p1993_p9 = pnand %p1992_p7, %p1986_p8 }
  0x7f   : > { %1996 = shalt.err (!%p1993_p9)
}
  0x80   : > { %s1997_s12 = scalar_lea.vmem %s2316_s15, 1024  ;;  %s2094_s26 = smov [#allocation2]  }
  0x81   : > { %p1998_p12 = scmp.ne.s32.totalorder %s2316_s15, %s1997_s12  ;;  %s2002_s29 = sshll.u32 %s2094_s26, 4  ;;  %s2003_s29 = int_to_ptr.vmem [resolvable:$false] %s2002_s29 }
  0x82   : > { %s2004_s30 = scalar_lea.vmem %s2003_s29, 2048  ;;  %p2005_p4 = scmp.lt.s32.totalorder %s2316_s15, %s2003_s29 }
  0x83   : > { %p2000_p3 = pnand %p1998_p12, %p1984_p1  ;;  %p2006_p13 = scmp.lt.s32.totalorder %s2004_s30, %s1997_s12 }
  0x85   : > { %p2001_p10 = pneg %p2000_p3  ;;  %p2007_p0 = por %p2006_p13, %p2005_p4 }
  0x87   : > { %p2008_p2 = pnand %p2007_p0, %p2001_p10 }
  0x89   : > { %2011 = shalt.err (!%p2008_p2)
}
  0x8a   : > { %1806 = dma.hbm_to_vmem [thread:$0]  (!%p2320_p11), %s2314_s6, 1024, %s2316_s15, %s226_s7  }
  0x8b   : > { %p2670_p8 = scmp.ne.s32.totalorder %s2661_s25, 0 }
  0x8c   : > { %s2352_s11 = sand.u32 (!%p2670_p8), 1, %s2078_s19  }
  0x8d   : > { %246 = sbr.rel (%p2670_p8) target bundleno = 517 (0x205), region = 40  ;;  %s1139_s8 = sshll.u32 (!%p2670_p8), %s2352_s11, 6 }
  0x8e   : > { %s249_s27 = scalar_lea.sflag (!%p2670_p8), [#allocation3], %s2352_s11  ;;  %s2356_s17 = scalar_lea.vmem (!%p2670_p8), [#allocation2], %s1139_s8 }
  0x94   : > { %2057 = dma.done.wait (%p2295_p6), %s249_s27, 1024  }
  0x95   : > { %2059 = vsyncadd (%p2295_p6), %s249_s27, 4294966272  ;;  %p2671_p4 = scmp.eq.s32.totalorder %s2150_s24, 0 }
  0x97   : > { %2061 = dma.done.wait (%p2671_p4), [#allocation6], 4096   ;;  %p2672_p10 = pmov %p2671_p4 }
  0x98   : > { %p2673_p11 = pmov %p2671_p4 }
  0x99   : > { %2063 = vsyncadd (%p2672_p10), [#allocation6], 4294963200 }
  0x9a   : > { %2065 = dma.done.wait (%p2673_p11), [#allocation9], 32   ;;  %p2674_p1 = pmov %p2671_p4 }
  0x9b   : > { %v2095_v0 = vmov 0.0|0.0   ;;  %vm2096_vm0 = vmmov 0   ;;  %v2097_v1 = vmov 0.0   ;;  %v311_v2 = vld [vmem:[#allocation7] sm:$0xff]  ;;  %v312_v3 = vld [vmem:[#allocation7 + $0x8] sm:$0xff]  ;;  %v313_v4 = vld [vmem:[#allocation7 + $0x10] sm:$0xff] }
  0x9c   : > { %2067 = vsyncadd (%p2674_p1), [#allocation9], 4294967264  ;;  %1570 = vmatprep.subr.bf16.mxu0 %v2095_v0  ;;  %1618 = vmatprep.subr.bf16.mxu1 %v2095_v0  ;;  %v2376_v5 = vpack.c.bf16 %v312_v3, %v311_v2  ;;  %v314_v6 = vld [vmem:[#allocation7 + $0x18] sm:$0xff]  ;;  %v315_v8 = vld [vmem:[#allocation7 + $0x20] sm:$0xff]  ;;  %s1144_s25 = sshll.u32 %s2352_s11, 5  ;;  %s1153_s6 = sshll.u32 %s2150_s24, 9 }
  0x9d   : > { %1322 = vmatprep.mubr.msk.f32.mxu0 %vm2096_vm0, %v2097_v1  ;;  %1392 = vmatprep.mubr.msk.f32.mxu1 %vm2096_vm0, %v2097_v1  ;;  %v2380_v7 = vpack.c.bf16 %v314_v6, %v313_v4  ;;  %v316_v9 = vld [vmem:[#allocation7 + $0x28] sm:$0xff]  ;;  %v317_v11 = vld [vmem:[#allocation7 + $0x30] sm:$0xff]  ;;  %v318_v12 = vld [vmem:[#allocation7 + $0x38] sm:$0xff]  ;;  %s2595_s23 = scalar_lea.vmem [#allocation11], %s1144_s25  ;;  %s2606_s10 = scalar_lea.hbm %s2657_s5, %s1153_s6 }
  0x9e   : > { %1572 = vmatpush3.bf16.msra.mxu0 %v2376_v5  ;;  %1620 = vmatpush3.bf16.msra.mxu1 %v2376_v5  ;;  %v2386_v10 = vpack.c.bf16 %v316_v9, %v315_v8  ;;  %v2392_v13 = vpack.c.bf16 %v318_v12, %v317_v11  ;;  %v319_v14 = vld [vmem:[#allocation7 + $0x40] sm:$0xff]  ;;  %v320_v15 = vld [vmem:[#allocation7 + $0x48] sm:$0xff]  ;;  %v321_v19 = vld [vmem:[#allocation7 + $0x50] sm:$0xff]  ;;  %s1020_s15 = sshll.u32 %s2595_s23, 4  ;;  %s1006_s22 = scalar_lea.sflag [#allocation4], %s2352_s11  ;;  %s2608_s15 = int_to_ptr.vmem [resolvable:$true] %s1020_s15 }
  0x9f   : > { %1573 = vmatprep.subr.bf16.mxu0 %v2095_v0  ;;  %1621 = vmatprep.subr.bf16.mxu1 %v2095_v0  ;;  %v2397_v16 = vld [vmem:[%s2356_s17] sm:$0xff]  ;;  %v2400_v17 = vld [vmem:[%s2356_s17 + $0x8] sm:$0xff]  ;;  %v2406_v18 = vpack.c.bf16 %v320_v15, %v319_v14  ;;  %v322_v20 = vld [vmem:[#allocation7 + $0x58] sm:$0xff]  ;;  %s2012_s12 = scalar_lea.vmem %s2608_s15, 512  ;;  %p2675_p5 = scmp.ne.s32.totalorder %s2667_s13, 0 }
  0xa0   : > { %509 = vadd.xlane.f32.xlu1 %v2400_v17  ;;  %331 = vadd.xlane.f32.xlu0 %v2397_v16  ;;  %v330_v21 = vld [vmem:[%s2356_s17 + $0x20] sm:$0xff]  ;;  %v508_v22 = vld [vmem:[%s2356_s17 + $0x28] sm:$0xff]  ;;  %v2413_v23 = vld [vmem:[%s2356_s17 + $0x10] sm:$0xff]  ;;  %v2417_v24 = vpack.c.bf16 %v322_v20, %v321_v19  ;;  %v336_v34 = vmul.f32 %v2397_v16, %v2397_v16  ;;  %v514_v39 = vmul.f32 %v2400_v17, %v2400_v17  ;;  %p2013_p6 = scmp.ne.s32.totalorder %s2608_s15, %s2012_s12  ;;  %s2098_s24 = smov [#allocation11]  }
  0xa1   : > { %v323_v25 = vld [vmem:[#allocation7 + $0x60] sm:$0xff]  ;;  %v324_v26 = vld [vmem:[#allocation7 + $0x68] sm:$0xff]  ;;  %v2422_v27 = vld [vmem:[%s2356_s17 + $0x30] sm:$0xff]  ;;  %v339_v33 = vmul.f32 %v330_v21, %v330_v21  ;;  %v517_v38 = vmul.f32 %v508_v22, %v508_v22  ;;  %v680_v44 = vmul.f32 %v2413_v23, %v2413_v23  ;;  %s2016_s26 = sshll.u32 %s2098_s24, 4  ;;  %s2017_s26 = int_to_ptr.vmem [resolvable:$false] %s2016_s26 }
  0xa2   : > { %1575 = vmatpush3.bf16.msra.mxu0 %v2380_v7  ;;  %1623 = vmatpush3.bf16.msra.mxu1 %v2380_v7  ;;  %v2427_v28 = vld [vmem:[%s2356_s17 + $0x18] sm:$0xff]  ;;  %v2431_v29 = vpack.c.bf16 %v324_v26, %v323_v25  ;;  %v325_v30 = vld [vmem:[#allocation7 + $0x70] sm:$0xff]  ;;  %v295_v36 = vld [vmem:[#allocation5] sm:$0xff]  ;;  %v683_v43 = vmul.f32 %v2422_v27, %v2422_v27  ;;  %p2014_p7 = pnand %p2013_p6, %p2675_p5  ;;  %s2018_s29 = scalar_lea.vmem %s2017_s26, 1024 }
  0xa3   : > { %1576 = vmatprep.subr.bf16.mxu0 %v2095_v0  ;;  %1624 = vmatprep.subr.bf16.mxu1 %v2095_v0  ;;  %v326_v31 = vld [vmem:[#allocation7 + $0x78] sm:$0xff]  ;;  %v296_v37 = vld [vmem:[#allocation5 + $0x8] sm:$0xff]  ;;  %v297_v41 = vld [vmem:[#allocation5 + $0x10] sm:$0xff]  ;;  %v846_v49 = vmul.f32 %v2427_v28, %v2427_v28  ;;  %p2019_p12 = scmp.lt.s32.totalorder %s2608_s15, %s2017_s26  ;;  %p2020_p3 = scmp.lt.s32.totalorder %s2018_s29, %s2012_s12 }
  0xa4   : > { %511 = vadd.xlane.f32.xlu1 %v508_v22  ;;  %333 = vadd.xlane.f32.xlu0 %v330_v21  ;;  %v2436_v32 = vld [vmem:[%s2356_s17 + $0x38] sm:$0xff]  ;;  %v2444_v35 = vpack.c.bf16 %v326_v31, %v325_v30  ;;  %v2452_v40 = vpack.c.bf16 %v296_v37, %v295_v36  ;;  %v299_v46 = vld [vmem:[#allocation5 + $0x20] sm:$0xff]  ;;  %v300_v47 = vld [vmem:[#allocation5 + $0x28] sm:$0xff]  ;;  %p2015_p9 = pneg %p2014_p7 }
  0xa5   : > { %v298_v42 = vld [vmem:[#allocation5 + $0x18] sm:$0xff]  ;;  %v849_v48 = vmul.f32 %v2436_v32, %v2436_v32  ;;  %v2476_v50 = vpack.c.bf16 %v300_v47, %v299_v46  ;;  %v301_v51 = vld [vmem:[#allocation5 + $0x30] sm:$0xff]  ;;  %v303_v54 = vld [vmem:[#allocation5 + $0x40] sm:$0xff]  ;;  %p2021_p13 = por %p2020_p3, %p2019_p12 }
  0xa6   : > { %1578 = vmatpush3.bf16.msra.mxu0 %v2386_v10  ;;  %1626 = vmatpush3.bf16.msra.mxu1 %v2386_v10  ;;  %v2462_v45 = vpack.c.bf16 %v298_v42, %v297_v41  ;;  %v302_v52 = vld [vmem:[#allocation5 + $0x38] sm:$0xff]  ;;  %v304_v55 = vld [vmem:[#allocation5 + $0x48] sm:$0xff]  ;;  %v305_v57 = vld [vmem:[#allocation5 + $0x50] sm:$0xff] }
  0xa7   : > { %1579 = vmatprep.subr.bf16.mxu0 %v2095_v0  ;;  %1627 = vmatprep.subr.bf16.mxu1 %v2095_v0  ;;  %v2482_v53 = vpack.c.bf16 %v302_v52, %v301_v51  ;;  %v2488_v56 = vpack.c.bf16 %v304_v55, %v303_v54  ;;  %v306_v58 = vld [vmem:[#allocation5 + $0x58] sm:$0xff]  ;;  %v307_v60 = vld [vmem:[#allocation5 + $0x60] sm:$0xff]  ;;  %v308_v61 = vld [vmem:[#allocation5 + $0x68] sm:$0xff]  ;;  %p2022_p0 = pnand %p2021_p13, %p2015_p9 }
  0xa8   : > { %677 = vadd.xlane.f32.xlu1 %v2422_v27  ;;  %675 = vadd.xlane.f32.xlu0 %v2413_v23  ;;  %v2494_v59 = vpack.c.bf16 %v306_v58, %v305_v57  ;;  %v2500_v62 = vpack.c.bf16 %v308_v61, %v307_v60  ;;  %v309_v63 = vld [vmem:[#allocation5 + $0x70] sm:$0xff]  ;;  %v310_v2 = vld [vmem:[#allocation5 + $0x78] sm:$0xff]  ;;  %v1146_v47 = vld [vmem:[#allocation10] ss:$0 sm:$0xff] }
  0xa9   : > { %v2506_v3 = vpack.c.bf16 %v310_v2, %v309_v63 }
  0xaa   : > { %1581 = vmatpush3.bf16.msra.mxu0 %v2392_v13  ;;  %1629 = vmatpush3.bf16.msra.mxu1 %v2392_v13 }
  0xab   : > { %1582 = vmatprep.subr.bf16.mxu0 %v2095_v0  ;;  %1630 = vmatprep.subr.bf16.mxu1 %v2095_v0 }
  0xac   : > { %843 = vadd.xlane.f32.xlu1 %v2436_v32  ;;  %841 = vadd.xlane.f32.xlu0 %v2427_v28 }
  0xae   : > { %1584 = vmatpush3.bf16.msra.mxu0 %v2406_v18  ;;  %1632 = vmatpush3.bf16.msra.mxu1 %v2406_v18 }
  0xaf   : > { %1585 = vmatprep.subr.bf16.mxu0 %v2095_v0  ;;  %1633 = vmatprep.subr.bf16.mxu1 %v2095_v0 }
  0xb0   : > { %340 = vadd.xlane.f32.xlu1 %v339_v33  ;;  %337 = vadd.xlane.f32.xlu0 %v336_v34 }
  0xb2   : > { %1587 = vmatpush3.bf16.msra.mxu0 %v2417_v24  ;;  %1635 = vmatpush3.bf16.msra.mxu1 %v2417_v24 }
  0xb3   : > { %1588 = vmatprep.subr.bf16.mxu0 %v2095_v0  ;;  %1636 = vmatprep.subr.bf16.mxu1 %v2095_v0 }
  0xb4   : > { %518 = vadd.xlane.f32.xlu1 %v517_v38  ;;  %515 = vadd.xlane.f32.xlu0 %v514_v39 }
  0xb6   : > { %1590 = vmatpush3.bf16.msra.mxu0 %v2431_v29  ;;  %1638 = vmatpush3.bf16.msra.mxu1 %v2431_v29 }
  0xb7   : > { %1591 = vmatprep.subr.bf16.mxu0 %v2095_v0  ;;  %1639 = vmatprep.subr.bf16.mxu1 %v2095_v0 }
  0xb8   : > { %684 = vadd.xlane.f32.xlu1 %v683_v43  ;;  %681 = vadd.xlane.f32.xlu0 %v680_v44 }
  0xba   : > { %1593 = vmatpush3.bf16.msra.mxu0 %v2444_v35  ;;  %1641 = vmatpush3.bf16.msra.mxu1 %v2444_v35 }
  0xbb   : > { %1594 = vmatprep.subr.bf16.mxu0 %v2095_v0  ;;  %1642 = vmatprep.subr.bf16.mxu1 %v2095_v0 }
  0xbc   : > { %850 = vadd.xlane.f32.xlu1 %v849_v48  ;;  %847 = vadd.xlane.f32.xlu0 %v846_v49 }
  0xbd   : > { %1323 = vmatmul.mubr.f32.vlgmr.msra.gmra.mrb[0].mxu0 %v330_v21  ;;  %1393 = vmatmul.mubr.f32.vlgmr.msra.gmra.mrb[0].mxu1 %v508_v22 }
  0xbe   : > { %1596 = vmatpush3.bf16.msra.mxu0 %v2452_v40  ;;  %1644 = vmatpush3.bf16.msra.mxu1 %v2452_v40 }
  0xbf   : > { %1597 = vmatprep.subr.bf16.mxu0 %v2095_v0  ;;  %1645 = vmatprep.subr.bf16.mxu1 %v2095_v0 }
  0xc0   : > { %1357 = vmatprep.mubr.msk.f32.mxu0 %vm2096_vm0, %v2097_v1  ;;  %1427 = vmatprep.mubr.msk.f32.mxu1 %vm2096_vm0, %v2097_v1 }
  0xc2   : > { %1599 = vmatpush3.bf16.msra.mxu0 %v2462_v45  ;;  %1647 = vmatpush3.bf16.msra.mxu1 %v2462_v45 }
  0xc3   : > { %1600 = vmatprep.subr.bf16.mxu0 %v2095_v0  ;;  %1648 = vmatprep.subr.bf16.mxu1 %v2095_v0 }
  0xc6   : > { %1602 = vmatpush3.bf16.msra.mxu0 %v2476_v50  ;;  %1650 = vmatpush3.bf16.msra.mxu1 %v2476_v50 }
  0xc7   : > { %1603 = vmatprep.subr.bf16.mxu0 %v2095_v0  ;;  %1651 = vmatprep.subr.bf16.mxu1 %v2095_v0 }
  0xca   : > { %1605 = vmatpush3.bf16.msra.mxu0 %v2482_v53  ;;  %1653 = vmatpush3.bf16.msra.mxu1 %v2482_v53 }
  0xcb   : > { %1606 = vmatprep.subr.bf16.mxu0 %v2095_v0  ;;  %1654 = vmatprep.subr.bf16.mxu1 %v2095_v0 }
  0xce   : > { %1608 = vmatpush3.bf16.msra.mxu0 %v2488_v56  ;;  %1656 = vmatpush3.bf16.msra.mxu1 %v2488_v56 }
  0xcf   : > { %1609 = vmatprep.subr.bf16.mxu0 %v2095_v0  ;;  %1657 = vmatprep.subr.bf16.mxu1 %v2095_v0 }
  0xd2   : > { %1611 = vmatpush3.bf16.msra.mxu0 %v2494_v59  ;;  %1659 = vmatpush3.bf16.msra.mxu1 %v2494_v59 }
  0xd3   : > { %1612 = vmatprep.subr.bf16.mxu0 %v2095_v0  ;;  %1660 = vmatprep.subr.bf16.mxu1 %v2095_v0 }
  0xd6   : > { %1614 = vmatpush3.bf16.msra.mxu0 %v2500_v62  ;;  %1662 = vmatpush3.bf16.msra.mxu1 %v2500_v62 }
  0xd7   : > { %1615 = vmatprep.subr.bf16.mxu0 %v2095_v0  ;;  %1663 = vmatprep.subr.bf16.mxu1 %v2095_v0 }
  0xda   : > { %1617 = vmatpush3.bf16.msra.mxu0 %v2506_v3  ;;  %1665 = vmatpush3.bf16.msra.mxu1 %v2506_v3 }
  0xdb   : > { %1666 = vmatprep.subr.bf16.mxu0 %v2095_v0  ;;  %1714 = vmatprep.subr.bf16.mxu1 %v2095_v0 }
  0xdd   : > { %1358 = vmatmul.mubr.f32.vlgmr.msra.gmra.mrb[0].mxu0 %v2397_v16  ;;  %1428 = vmatmul.mubr.f32.vlgmr.msra.gmra.mrb[0].mxu1 %v2400_v17 }
  0xde   : > { %1668 = vmatpush3.bf16.msra.mxu0 %v2376_v5  ;;  %1716 = vmatpush3.bf16.msra.mxu1 %v2376_v5 }
  0xdf   : > { %1669 = vmatprep.subr.bf16.mxu0 %v2095_v0  ;;  %1717 = vmatprep.subr.bf16.mxu1 %v2095_v0 }
  0xe0   : > { %1462 = vmatprep.mubr.msk.f32.mxu0 %vm2096_vm0, %v2097_v1  ;;  %1532 = vmatprep.mubr.msk.f32.mxu1 %vm2096_vm0, %v2097_v1 }
  0xe2   : > { %1671 = vmatpush3.bf16.msra.mxu0 %v2380_v7  ;;  %1719 = vmatpush3.bf16.msra.mxu1 %v2380_v7 }
  0xe3   : > { %1672 = vmatprep.subr.bf16.mxu0 %v2095_v0  ;;  %1720 = vmatprep.subr.bf16.mxu1 %v2095_v0 }
  0xe6   : > { %1674 = vmatpush3.bf16.msra.mxu0 %v2386_v10  ;;  %1722 = vmatpush3.bf16.msra.mxu1 %v2386_v10 }
  0xe7   : > { %1675 = vmatprep.subr.bf16.mxu0 %v2095_v0  ;;  %1723 = vmatprep.subr.bf16.mxu1 %v2095_v0 }
  0xea   : > { %1677 = vmatpush3.bf16.msra.mxu0 %v2392_v13  ;;  %1725 = vmatpush3.bf16.msra.mxu1 %v2392_v13 }
  0xeb   : > { %1678 = vmatprep.subr.bf16.mxu0 %v2095_v0  ;;  %1726 = vmatprep.subr.bf16.mxu1 %v2095_v0 }
  0xee   : > { %1680 = vmatpush3.bf16.msra.mxu0 %v2406_v18  ;;  %1728 = vmatpush3.bf16.msra.mxu1 %v2406_v18 }
  0xef   : > { %1681 = vmatprep.subr.bf16.mxu0 %v2095_v0  ;;  %1729 = vmatprep.subr.bf16.mxu1 %v2095_v0 }
  0xf2   : > { %1683 = vmatpush3.bf16.msra.mxu0 %v2417_v24  ;;  %1731 = vmatpush3.bf16.msra.mxu1 %v2417_v24 }
  0xf3   : > { %1684 = vmatprep.subr.bf16.mxu0 %v2095_v0  ;;  %1732 = vmatprep.subr.bf16.mxu1 %v2095_v0 }
  0xf6   : > { %1686 = vmatpush3.bf16.msra.mxu0 %v2431_v29  ;;  %1734 = vmatpush3.bf16.msra.mxu1 %v2431_v29 }
  0xf7   : > { %1687 = vmatprep.subr.bf16.mxu0 %v2095_v0  ;;  %1735 = vmatprep.subr.bf16.mxu1 %v2095_v0 }
  0xfa   : > { %1689 = vmatpush3.bf16.msra.mxu0 %v2444_v35  ;;  %1737 = vmatpush3.bf16.msra.mxu1 %v2444_v35 }
  0xfb   : > { %1690 = vmatprep.subr.bf16.mxu0 %v2095_v0  ;;  %1738 = vmatprep.subr.bf16.mxu1 %v2095_v0 }
  0xfd   : > { %1463 = vmatmul.mubr.f32.vlgmr.msra.gmra.mrb[2].mxu0 %v2422_v27  ;;  %1533 = vmatmul.mubr.f32.vlgmr.msra.gmra.mrb[2].mxu1 %v2436_v32 }
  0xfe   : > { %1692 = vmatpush3.bf16.msra.mxu0 %v2452_v40  ;;  %1740 = vmatpush3.bf16.msra.mxu1 %v2452_v40 }
  0xff   : > { %1693 = vmatprep.subr.bf16.mxu0 %v2095_v0  ;;  %1741 = vmatprep.subr.bf16.mxu1 %v2095_v0 }
 0x100   : > { %1497 = vmatprep.mubr.msk.f32.mxu0 %vm2096_vm0, %v2097_v1  ;;  %1567 = vmatprep.mubr.msk.f32.mxu1 %vm2096_vm0, %v2097_v1 }
 0x102   : > { %1695 = vmatpush3.bf16.msra.mxu0 %v2462_v45  ;;  %1743 = vmatpush3.bf16.msra.mxu1 %v2462_v45 }
 0x103   : > { %1696 = vmatprep.subr.bf16.mxu0 %v2095_v0  ;;  %1744 = vmatprep.subr.bf16.mxu1 %v2095_v0 }
 0x106   : > { %1698 = vmatpush3.bf16.msra.mxu0 %v2476_v50  ;;  %1746 = vmatpush3.bf16.msra.mxu1 %v2476_v50 }
 0x107   : > { %1699 = vmatprep.subr.bf16.mxu0 %v2095_v0  ;;  %1747 = vmatprep.subr.bf16.mxu1 %v2095_v0 }
 0x10a   : > { %1701 = vmatpush3.bf16.msra.mxu0 %v2482_v53  ;;  %1749 = vmatpush3.bf16.msra.mxu1 %v2482_v53 }
 0x10b   : > { %1702 = vmatprep.subr.bf16.mxu0 %v2095_v0  ;;  %1750 = vmatprep.subr.bf16.mxu1 %v2095_v0 }
 0x10e   : > { %1704 = vmatpush3.bf16.msra.mxu0 %v2488_v56  ;;  %1752 = vmatpush3.bf16.msra.mxu1 %v2488_v56 }
 0x10f   : > { %1705 = vmatprep.subr.bf16.mxu0 %v2095_v0  ;;  %1753 = vmatprep.subr.bf16.mxu1 %v2095_v0 }
 0x112   : > { %1707 = vmatpush3.bf16.msra.mxu0 %v2494_v59  ;;  %1755 = vmatpush3.bf16.msra.mxu1 %v2494_v59 }
 0x113   : > { %1708 = vmatprep.subr.bf16.mxu0 %v2095_v0  ;;  %1756 = vmatprep.subr.bf16.mxu1 %v2095_v0 }
 0x116   : > { %1710 = vmatpush3.bf16.msra.mxu0 %v2500_v62  ;;  %1758 = vmatpush3.bf16.msra.mxu1 %v2500_v62 }
 0x117   : > { %1711 = vmatprep.subr.bf16.mxu0 %v2095_v0  ;;  %1759 = vmatprep.subr.bf16.mxu1 %v2095_v0  ;;  %v1145_v0 = vld [vmem:[#allocation8] ss:$0 sm:$0xff] }
 0x11a   : > { %1713 = vmatpush3.bf16.msra.mxu0 %v2506_v3  ;;  %1761 = vmatpush3.bf16.msra.mxu1 %v2506_v3 }
 0x11d   : > { %1498 = vmatmul.mubr.f32.vlgmr.msra.gmra.mrb[2].mxu0 %v2413_v23  ;;  %1568 = vmatmul.mubr.f32.vlgmr.msra.gmra.mrb[2].mxu1 %v2427_v28 }
 0x12d   : > { %v510_v1 = vpop.xlane.xlu1 %509  ;;  %v332_v4 = vpop.xlane.xlu0 %331 }
 0x131   : > { %v512_v5 = vpop.xlane.xlu1 %511  ;;  %v334_v6 = vpop.xlane.xlu0 %333 }
 0x132   : > { %v335_v19 = vadd.f32 %v334_v6, %v332_v4  ;;  %v513_v20 = vadd.f32 %v512_v5, %v510_v1 }
 0x134   : > { %v343_v23 = vmul.f32 0.00390625, %v335_v19  ;;  %v521_v25 = vmul.f32 0.00390625, %v513_v20 }
 0x135   : > { %v678_v7 = vpop.xlane.xlu1 %677  ;;  %v676_v8 = vpop.xlane.xlu0 %675 }
 0x136   : > { %v679_v9 = vadd.f32 %v678_v7, %v676_v8  ;;  %v345_v27 = vmul.f32 %v343_v23, %v343_v23  ;;  %v523_v29 = vmul.f32 %v521_v25, %v521_v25  ;;  %v496_v37 = vmul.f32 %v1145_v0, %v343_v23 }
 0x137   : > { %v668_v38 = vmul.f32 %v1145_v0, %v521_v25 }
 0x138   : > { %v687_v13 = vmul.f32 0.00390625, %v679_v9 }
 0x139   : > { %v844_v10 = vpop.xlane.xlu1 %843  ;;  %v842_v11 = vpop.xlane.xlu0 %841 }
 0x13a   : > { %v845_v12 = vadd.f32 %v844_v10, %v842_v11  ;;  %v2590_v15 = vmul.f32 %v1145_v0, %v687_v13  ;;  %v689_v58 = vmul.f32 %v687_v13, %v687_v13 }
 0x13c   : > { %v853_v14 = vmul.f32 0.00390625, %v845_v12 }
 0x13d   : > { %v341_v17 = vpop.xlane.xlu1 %340  ;;  %v338_v18 = vpop.xlane.xlu0 %337 }
 0x13e   : > { %v2592_v16 = vmul.f32 %v1145_v0, %v853_v14  ;;  %v342_v24 = vadd.f32 %v341_v17, %v338_v18  ;;  %v855_v60 = vmul.f32 %v853_v14, %v853_v14 }
 0x140   : > { %v344_v28 = vmul.f32 0.00390625, %v342_v24 }
 0x141   : > { %v519_v21 = vpop.xlane.xlu1 %518  ;;  %v516_v22 = vpop.xlane.xlu0 %515 }
 0x142   : > { %v520_v26 = vadd.f32 %v519_v21, %v516_v22  ;;  %v346_v31 = vsub.f32 %v344_v28, %v345_v27 }
 0x144   : > { %v522_v30 = vmul.f32 0.00390625, %v520_v26  ;;  %v347_v33 = vmax.f32 %v346_v31, 0.0 }
 0x145   : > { %v685_v52 = vpop.xlane.xlu1 %684  ;;  %v682_v53 = vpop.xlane.xlu0 %681 }
 0x146   : > { %v524_v32 = vsub.f32 %v522_v30, %v523_v29  ;;  %v348_v35 = vadd.f32 1e-05, %v347_v33  ;;  %v686_v56 = vadd.f32 %v685_v52, %v682_v53 }
 0x148   : > { %v525_v34 = vmax.f32 %v524_v32, 0.0  ;;  %1862 = vrsqrt.f32 %v348_v35  ;;  %v688_v59 = vmul.f32 0.00390625, %v686_v56 }
 0x149   : > { %v851_v54 = vpop.xlane.xlu1 %850  ;;  %v848_v55 = vpop.xlane.xlu0 %847 }
 0x14a   : > { %v526_v36 = vadd.f32 1e-05, %v525_v34  ;;  %v852_v57 = vadd.f32 %v851_v54, %v848_v55  ;;  %v690_v62 = vsub.f32 %v688_v59, %v689_v58 }
 0x14c   : > { %1864 = vrsqrt.f32 %v526_v36  ;;  %v854_v61 = vmul.f32 0.00390625, %v852_v57  ;;  %v691_v2 = vmax.f32 %v690_v62, 0.0 }
 0x14e   : > { %v856_v63 = vsub.f32 %v854_v61, %v855_v60  ;;  %v692_v1 = vadd.f32 1e-05, %v691_v2 }
 0x150   : > { %v857_v3 = vmax.f32 %v856_v63, 0.0  ;;  %1866 = vrsqrt.f32 %v692_v1 }
 0x152   : > { %v1863_v39 = vpop.eup %1862  ;;  %v858_v4 = vadd.f32 1e-05, %v857_v3 }
 0x154   : > { %1868 = vrsqrt.f32 %v858_v4 }
 0x156   : > { %v1865_v40 = vpop.eup %1864 }
 0x15a   : > { %v1867_v7 = vpop.eup %1866 }
 0x15e   : > { %v1869_v12 = vpop.eup %1868 }
 0x1b0   : > { %v486_v41 = vpop.f32.mrb[0].mxu0  ;;  %v664_v42 = vpop.f32.mrb[0].mxu1 }
 0x1b1   : > { %v497_v43 = vsub.f32 %v486_v41, %v496_v37  ;;  %v669_v44 = vsub.f32 %v664_v42, %v668_v38  ;;  %v1359_v45 = vpop.f32.mrb[1].mxu0  ;;  %v1429_v46 = vpop.f32.mrb[1].mxu1 }
 0x1b3   : > { %v498_v48 = vmul.f32 %v1863_v39, %v497_v43  ;;  %v670_v49 = vmul.f32 %v1865_v40, %v669_v44 }
 0x1b5   : > { %v505_v50 = vadd.f32 %v1146_v47, %v498_v48  ;;  %v671_v51 = vadd.f32 %v1146_v47, %v670_v49 }
 0x1b7   : > { %506 = vst [vmem:[%s2595_s23] sm:$0xff] %v505_v50  ;;  %672 = vst [vmem:[%s2595_s23 + $0x8] sm:$0xff] %v671_v51 }
 0x1f0   : > { %v830_v5 = vpop.f32.mrb[2].mxu0  ;;  %v996_v6 = vpop.f32.mrb[2].mxu1 }
 0x1f1   : > { %v835_v8 = vsub.f32 %v830_v5, %v2590_v15  ;;  %v1001_v9 = vsub.f32 %v996_v6, %v2592_v16  ;;  %v1499_v10 = vpop.f32.mrb[3].mxu0  ;;  %v1569_v11 = vpop.f32.mrb[3].mxu1 }
 0x1f3   : > { %v836_v13 = vmul.f32 %v1867_v7, %v835_v8  ;;  %v1002_v0 = vmul.f32 %v1869_v12, %v1001_v9 }
 0x1f5   : > { %v837_v14 = vadd.f32 %v1146_v47, %v836_v13  ;;  %v1003_v17 = vadd.f32 %v1146_v47, %v1002_v0 }
 0x1f7   : > { %838 = vst [vmem:[%s2595_s23 + $0x10] sm:$0xff] %v837_v14  ;;  %1004 = vst [vmem:[%s2595_s23 + $0x18] sm:$0xff] %v1003_v17 }
 0x1f8   : > { %2025 = shalt.err (!%p2022_p0)
}
 0x1f9   : > { %s2026_s30 = scalar_lea.hbm %s2606_s10, 512  ;;  %s2030_s27 = scalar_lea.hbm %s2657_s5, 1024 }
 0x1fa   : > { %p2027_p2 = scmp.ne.s32.totalorder %s2606_s10, %s2026_s30  ;;  %p2031_p10 = scmp.lt.u32.totalorder %s2606_s10, %s2657_s5 }
 0x1fb   : > { %p2032_p11 = scmp.lt.u32.totalorder %s2030_s27, %s2026_s30  ;;  %p2034_p6 = scmp.lt.u32.totalorder %s2026_s30, %s2606_s10 }
 0x1fc   : > { %p2028_p8 = pnand %p2027_p2, %p2675_p5 }
 0x1fd   : > { %p2033_p1 = por %p2032_p11, %p2031_p10 }
 0x1fe   : > { %p2029_p4 = pneg %p2028_p8 }
 0x1ff   : > { %p2035_p7 = por %p2034_p6, %p2033_p1 }
 0x201   : > { %p2036_p9 = pnand %p2035_p7, %p2029_p4 }
 0x203   : > { %2039 = shalt.err (!%p2036_p9)
}
 0x204   : > { %1788 = dma.vmem_to_hbm [thread:$0]  (%p2675_p5), %s2608_s15, 512, %s2606_s10, %s1006_s22  }
 0x205 PF: > { %s1032_s23 = sand.u32 1, %s2074_s18   ;;  %p2676_p12 = scmp.ne.s32.totalorder %s2668_s14, 0 }
 0x206   : > { %p2677_p3 = scmp.ge.s32.totalorder %s2086_s21, 2  ;;  %s1033_s6 = scalar_lea.sflag [#allocation4], %s1032_s23 }
 0x208   : > { %p1808_p13 = pnand %p2677_p3, %p2676_p12 }
 0x20a   : > { %2069 = dma.done.wait (!%p1808_p13), %s1033_s6, 512  }
 0x20b   : > { %2071 = vsyncadd (!%p1808_p13), %s1033_s6, 4294966784  ;;  %p20_p0 = scmp.ge.s32.totalorder %s2276_s28, 4   ;;  %s2678_s18 = smov %s2078_s19 }
 0x20c   : > { %s2679_s19 = smov %s2082_s20  ;;  %s2680_s20 = smov %s2287_s9 }
 0x20d   : > { %s2681_s21 = smov %s2276_s28  ;;  %22 = sbr.rel (!%p20_p0) target bundleno = 7 (0x7), region = 101 }
 0x214   :  { %1038 = vsyncpa [#allocation3], 1 }
 0x215   :  { %1040 = vsyncpa [#allocation3 + $0x1], 1 }
 0x216   :  { %1041 = vsyncpa [#allocation6], 1 }
 0x217   :  { %1042 = vsyncpa [#allocation9], 1 }
 0x218   :  { %1043 = vsyncpa [#allocation4], 1 }
 0x219   :  { %1045 = vsyncpa [#allocation4 + $0x1], 1 }

</bundles_post_ra>
